<compile_context>
chip_gen: v7x
topology: tpu7x:2x2x1
jax: 0.10.0
libtpu: 0.0.40
codegen_flags: <defaults>
</compile_context>

<pallas_src>
import functools

import jax
import jax.numpy as jnp
from jax.experimental import pallas as pl
from jax.experimental.pallas import tpu as pltpu


_LANE = 128          # lane-dense output width (unmasked vst)
_TILE_ROWS = 8192    # bf16: 8192*128*2 B = 2 MiB/tile, 4 MiB double-buffered
                     # (fits comfortably under v7x's 64 MiB VMEM)


def _round_up(x: int, m: int) -> int:
    return (x + m - 1) // m * m


def _bernoulli_mask_kernel(seed_ref, out_ref, *, thr24: int):
    """Write a Bernoulli(keep_prob) {0,1} tile using a counter-based hash."""
    tile_rows, lane_n = out_ref.shape
    row0 = pl.program_id(0) * tile_rows

    # Global element index of every entry in this tile (counter for the hash).
    r_idx = jax.lax.broadcasted_iota(jnp.int32, (tile_rows, lane_n), 0)
    c_idx = jax.lax.broadcasted_iota(jnp.int32, (tile_rows, lane_n), 1)
    g = ((row0 + r_idx) * lane_n + c_idx).astype(jnp.uint32)

    # Mix in the seed, then a lowbias32-style finalizer (good 32-bit hash).
    seed_mix = seed_ref[0].astype(jnp.uint32) * jnp.uint32(0x9E3779B9)
    x = g ^ seed_mix
    x = (x ^ (x >> 16)) * jnp.uint32(0x7FEB352D)
    x = (x ^ (x >> 15)) * jnp.uint32(0x846CA68B)
    x = x ^ (x >> 16)

    # Integer-domain Bernoulli test on 24 uniform bits (keep_prob quantized to
    # multiples of 2^-24; negligible bias).
    r24 = (x & jnp.uint32(0x00FFFFFF)).astype(jnp.int32)
    out_ref[...] = (r24 < thr24).astype(out_ref.dtype)


class BaseMaskGenerator:
    """Pallas analogue of the abstract PyTorch BaseMaskGenerator."""

    def __init__(self, keep_prob: float = 0.5, dtype=jnp.bfloat16):
        self.keep_prob = float(keep_prob)
        self.dtype = dtype

    def forward(self, shape, seed: int = 0):
        b, t, d = (int(s) for s in shape)
        total = b * t * d

        # Lane-dense slab: (rows, 128); rows padded to a multiple of 16 so the
        # bf16 [16, 128] vreg packing / (8, 128) block constraint always holds.
        rows = _round_up(pl.cdiv(total, _LANE), 16)
        tile_rows = min(_TILE_ROWS, rows)
        num_tiles = pl.cdiv(rows, tile_rows)

        thr24 = max(0, min(1 << 24, int(round(self.keep_prob * (1 << 24)))))
        seed_arr = jnp.asarray([seed], dtype=jnp.int32)
        kernel = functools.partial(_bernoulli_mask_kernel, thr24=thr24)

        itemsize = jnp.dtype(self.dtype).itemsize
        tile_bytes = tile_rows * _LANE * itemsize

        flat = pl.pallas_call(
            kernel,
            out_shape=jax.ShapeDtypeStruct((rows, _LANE), self.dtype),
            grid=(num_tiles,),
            in_specs=[
                # Scalar seed lives in SMEM (cheap scalar read inside kernel).
                pl.BlockSpec(memory_space=pltpu.MemorySpace.SMEM),
            ],
            out_specs=pl.BlockSpec((tile_rows, _LANE), lambda i: (i, 0)),
            compiler_params=pltpu.CompilerParams(
                # Independent tiles (counter-based hash) -> shard across TCs.
                dimension_semantics=("parallel",),
                vmem_limit_bytes=max(4 * tile_bytes, 4 << 20),
            ),
            cost_estimate=pl.CostEstimate(
                flops=0,
                transcendentals=0,
                bytes_accessed=rows * _LANE * itemsize,
            ),
        )(seed_arr)

        # Layout plumbing only: drop padding and restore (B, T, D).
        return flat.reshape(-1)[:total].reshape(b, t, d)

    def __call__(self, shape, seed: int = 0):
        return self.forward(shape, seed)


if __name__ == "__main__":
    key = jax.random.PRNGKey(0)
    # Small shape consistent with the forward signature: (B, T, D) = (2, 8, 32).
    shape = (2, 8, 32)
    # Deterministic seed derived from PRNGKey(0) (stands in for torch.Generator).
    seed = int(jax.random.randint(key, (), 0, 2**31 - 1))

    gen = BaseMaskGenerator(keep_prob=0.5, dtype=jnp.bfloat16)
    mask = gen(shape, seed=seed)
    mask = jax.block_until_ready(mask)

    assert mask.shape == shape, mask.shape
    assert mask.dtype == jnp.bfloat16, mask.dtype
    # Mask must be exactly {0, 1}.
    assert bool(jnp.all((mask == 0.0) | (mask == 1.0)))
    # Deterministic for a fixed seed.
    mask2 = jax.block_until_ready(gen(shape, seed=seed))
    assert bool(jnp.all(mask == mask2))
    # Keep-rate roughly matches keep_prob (loose bound for 512 samples).
    frac = float(jnp.mean(mask.astype(jnp.float32)))
    assert 0.25 < frac < 0.75, frac

    print("KERNEL_OK")
</pallas_src>

<mosaic_0001>
module attributes {stable_mosaic.version = 11 : i64} {
  func.func @_bernoulli_mask_kernel(%arg0: i32, %arg1: memref<1xi32, #tpu.memory_space<smem>>, %arg2: memref<16x128xbf16, #tpu.memory_space<vmem>>) attributes {dimension_semantics = [#tpu.dimension_semantics<parallel>], iteration_bounds = array<i64: 1>, scalar_prefetch = 0 : i64, scratch_operands = 0 : i64, tpu.core_type = #tpu.core_type<tc>, window_params = [{transform_indices = @transform_0, window_bounds = array<i64: 1>}, {transform_indices = @transform_1, window_bounds = array<i64: 16, 128>}]} {
    %c16_i32 = arith.constant 16 : i32
    %0 = arith.muli %arg0, %c16_i32 : i32
    %1 = tpu.iota {dimensions = array<i32: 0>} : vector<16x128xi32>
    %2 = tpu.iota {dimensions = array<i32: 1>} : vector<16x128xi32>
    %3 = vector.broadcast %0 : i32 to vector<16x128xi32>
    %4 = arith.addi %3, %1 : vector<16x128xi32>
    %c128_i32 = arith.constant 128 : i32
    %5 = vector.broadcast %c128_i32 : i32 to vector<16x128xi32>
    %6 = arith.muli %4, %5 : vector<16x128xi32>
    %7 = arith.addi %6, %2 : vector<16x128xi32>
    %c0 = arith.constant 0 : index
    %8 = memref.load %arg1[%c0] : memref<1xi32, #tpu.memory_space<smem>>
    %c-1640531527_i32 = arith.constant -1640531527 : i32
    %9 = arith.muli %8, %c-1640531527_i32 : i32
    %10 = vector.broadcast %9 : i32 to vector<16x128xi32>
    %11 = arith.xori %7, %10 : vector<16x128xi32>
    %c16_i32_0 = arith.constant 16 : i32
    %12 = vector.broadcast %c16_i32_0 : i32 to vector<16x128xi32>
    %13 = arith.shrui %11, %12 : vector<16x128xi32>
    %14 = arith.xori %11, %13 : vector<16x128xi32>
    %c2146121005_i32 = arith.constant 2146121005 : i32
    %15 = vector.broadcast %c2146121005_i32 : i32 to vector<16x128xi32>
    %16 = arith.muli %14, %15 : vector<16x128xi32>
    %c15_i32 = arith.constant 15 : i32
    %17 = vector.broadcast %c15_i32 : i32 to vector<16x128xi32>
    %18 = arith.shrui %16, %17 : vector<16x128xi32>
    %19 = arith.xori %16, %18 : vector<16x128xi32>
    %c-2073254261_i32 = arith.constant -2073254261 : i32
    %20 = vector.broadcast %c-2073254261_i32 : i32 to vector<16x128xi32>
    %21 = arith.muli %19, %20 : vector<16x128xi32>
    %c16_i32_1 = arith.constant 16 : i32
    %22 = vector.broadcast %c16_i32_1 : i32 to vector<16x128xi32>
    %23 = arith.shrui %21, %22 : vector<16x128xi32>
    %24 = arith.xori %21, %23 : vector<16x128xi32>
    %c16777215_i32 = arith.constant 16777215 : i32
    %25 = vector.broadcast %c16777215_i32 : i32 to vector<16x128xi32>
    %26 = arith.andi %24, %25 : vector<16x128xi32>
    %c8388608_i32 = arith.constant 8388608 : i32
    %27 = vector.broadcast %c8388608_i32 : i32 to vector<16x128xi32>
    %28 = arith.cmpi slt, %26, %27 : vector<16x128xi32>
    %29 = arith.extui %28 : vector<16x128xi1> to vector<16x128xi32>
    %30 = arith.sitofp %29 : vector<16x128xi32> to vector<16x128xf32>
    %31 = arith.truncf %30 : vector<16x128xf32> to vector<16x128xbf16>
    %c0_2 = arith.constant 0 : index
    %c0_3 = arith.constant 0 : index
    %32 = vector.load %arg2[%c0_2, %c0_3] : memref<16x128xbf16, #tpu.memory_space<vmem>>, vector<16x128xbf16>
    tpu.vector_store %arg2[%c0_2, %c0_3], %31 {strides = array<i32>} : memref<16x128xbf16, #tpu.memory_space<vmem>>, vector<16x128xbf16>,
    return
  }
  func.func @transform_0(%arg0: i32) -> i32 {
    %c0_i32 = arith.constant 0 : i32
    %c0_i32_0 = arith.constant 0 : i32
    return %c0_i32 : i32
  }
  func.func @transform_1(%arg0: i32) -> (i32, i32) {
    %c0_i32 = arith.constant 0 : i32
    %c0_i32_0 = arith.constant 0 : i32
    return %arg0, %c0_i32 : i32, i32
  }
}

</mosaic_0001>

<bundles_post_ra>
// kernel: tpu_custom_call.1
= control target key start
LH: loop header
LB: loop body
LE: loop exit
PB: predicated region body
PF: predicated region fallthrough
CT: control target
= control target key end

     0   :  { %v11_v0 = vlaneseq  ;;  %s144_s0 = inlined_call_operand.<no memory space> [shape: s32[1], index: 0, kind: input, shape index: {}]   ;;  %s145_s1 = inlined_call_operand.hbm [shape: bf16[16,128], index: 1, kind: output, shape index: {}]  }
   0x1   :  { %7 = vsyncpa [#allocation4], 0  ;;  %s24_s8 = smul.u32 2654435769, %s144_s0  ;;  %v115_v29 = vmov 0.0   ;;  %s116_s0 = smov [#allocation3]  }
   0x2   :  { %v12_v1 = vshrl.u32 %v11_v0, 7  ;;  %v15_v2 = vand.u32 127, %v11_v0  ;;  %s67_s9 = sshll.u32 %s116_s0, 4  ;;  %s68_s9 = int_to_ptr.vmem [resolvable:$true] %s67_s9 }
   0x3   :  { %v25_v5 = vstv %s24_s8  ;;  %s91_s10 = scalar_lea.vmem %s68_s9, 128  ;;  %p96_p1 = scmp.lt.s32.totalorder %s68_s9, %s68_s9 }
   0x4   :  { %v13_v3 = vadd.s32 8, %v12_v1  ;;  %v19_v4 = vmul.u32 128, %v12_v1  ;;  %p92_p0 = scmp.ne.s32.totalorder %s68_s9, %s91_s10  ;;  %p97_p2 = scmp.lt.s32.totalorder %s91_s10, %s91_s10 }
   0x6   :  { %v20_v6 = vmul.u32 128, %v13_v3  ;;  %v21_v7 = vadd.s32 %v19_v4, %v15_v2  ;;  %p98_p3 = por %p97_p2, %p96_p1 }
   0x8   :  { %v22_v8 = vadd.s32 %v20_v6, %v15_v2  ;;  %v26_v9 = vxor.u32 %v25_v5, %v21_v7  ;;  %p99_p4 = pnand %p98_p3, %p92_p0 }
   0xa   :  { %v27_v10 = vxor.u32 %v25_v5, %v22_v8  ;;  %v28_v11 = vshrl.u32 %v26_v9, 16 }
   0xc   :  { %v29_v12 = vshrl.u32 %v27_v10, 16  ;;  %v30_v13 = vxor.u32 %v28_v11, %v26_v9 }
   0xe   :  { %v31_v14 = vxor.u32 %v29_v12, %v27_v10  ;;  %v32_v15 = vmul.u32 2146121005, %v30_v13 }
  0x10   :  { %v33_v16 = vmul.u32 2146121005, %v31_v14  ;;  %v34_v17 = vshrl.u32 %v32_v15, 15 }
  0x12   :  { %v35_v18 = vshrl.u32 %v33_v16, 15  ;;  %v36_v19 = vxor.u32 %v34_v17, %v32_v15 }
  0x14   :  { %v37_v20 = vxor.u32 %v35_v18, %v33_v16  ;;  %v38_v21 = vmul.u32 2221713035, %v36_v19 }
  0x16   :  { %v39_v22 = vmul.u32 2221713035, %v37_v20  ;;  %v40_v23 = vshrl.u32 %v38_v21, 16 }
  0x18   :  { %v41_v24 = vshrl.u32 %v39_v22, 16  ;;  %v42_v25 = vxor.u32 %v40_v23, %v38_v21 }
  0x1a   :  { %v43_v26 = vxor.u32 %v41_v24, %v39_v22  ;;  %v44_v27 = vand.u32 16777215, %v42_v25 }
  0x1c   :  { %v45_v28 = vand.u32 16777215, %v43_v26  ;;  %vm46_vm0 = vcmp.lt.s32.totalorder %v44_v27, 8388608 }
  0x1d   :  { %v78_v30 = vsel %vm46_vm0, 1.0, %v115_v29 }
  0x1e   :  { %vm47_vm1 = vcmp.lt.s32.totalorder %v45_v28, 8388608 }
  0x1f   :  { %v79_v31 = vsel %vm47_vm1, 1.0, %v115_v29 }
  0x20   :  { %v85_v32 = vpack.c.bf16 %v79_v31, %v78_v30 }
  0x22   :  { %86 = vst [vmem:[#allocation3] sm:$0xff] %v85_v32  }
  0x23   :  { %102 = shalt.err (!%p99_p4)
}
  0x24   :  { %s103_s13 = scalar_lea.hbm %s145_s1, 128 }
  0x25   :  { %p104_p5 = scmp.ne.s32.totalorder %s145_s1, %s103_s13  ;;  %p107_p6 = scmp.lt.u32.totalorder %s103_s13, %s145_s1 }
  0x27   :  { %p109_p7 = pnand %p107_p6, %p104_p5 }
  0x29   :  { %112 = shalt.err (!%p109_p7)
}
  0x2a   :  { %s117_s18 = smov 64   ;;  %s118_s19 = smov 4  }
  0x2b   :  { %73 = dma.vmem_to_hbm [thread:$0]  %s68_s9, 128, %s145_s1, [#allocation4], %s117_s18, %s117_s18, %s118_s19  }
  0x2c   :  { %113 = dma.done.wait [#allocation4], 128  }
  0x2d   :  { %114 = vsyncadd [#allocation4], 4294967168 }
  0x2e   :  { %77 = vsyncpa [#allocation4], 1 }

</bundles_post_ra>
